<compile_context>
chip_gen: v7x
topology: tpu7x:2x2x1
jax: 0.10.0
libtpu: 0.0.40
codegen_flags: <defaults>
</compile_context>

<pallas_src>
import functools

import jax
import jax.numpy as jnp
from jax.experimental import pallas as pl
from jax.experimental.pallas import tpu as pltpu

_NEG_LARGE = -1.0e30  # logit pad for padded classes (finite -> no 0*inf NaNs)


def _round_up(v, m):
    return (v + m - 1) // m * m


def _categorical_kernel(*refs, deterministic):
    if deterministic:
        x_ref, w_ref, b_ref, pred_ref, logp_ref, ent_ref = refs
        g_ref = None
    else:
        x_ref, w_ref, b_ref, g_ref, pred_ref, logp_ref, ent_ref = refs

    n_pad = w_ref.shape[0]
    bb = x_ref.shape[0]

    # logits^T (classes on sublanes, batch on lanes): contract the shared D axis
    # of W (N,D) and x (BB,D) -- same dot_general pattern as q.k^T on the MXU.
    # (Optionally cast x/W to bf16 here to halve the dominant x HBM traffic.)
    logits = jax.lax.dot_general(
        w_ref[...], x_ref[...],
        dimension_numbers=(((1,), (1,)), ((), ())),
        preferred_element_type=jnp.float32) + b_ref[...]          # (n_pad, bb)

    # ---- numerically stable log-softmax over the class (sublane) axis ----
    m = jnp.max(logits, axis=0, keepdims=True)                    # (1, bb)
    z = logits - m
    ez = jnp.exp(z)
    se = jnp.sum(ez, axis=0, keepdims=True)                       # (1, bb)
    log_se = jnp.log(se)
    # TODO(synk): pl.reciprocal(se, approx=True) would push this onto the EUP on
    # real TPUs; the plain divide (on a (1, bb) vector only) keeps the kernel
    # runnable under CPU interpret mode as well.
    inv_se = 1.0 / se
    log_probs = z - log_se                                        # (n_pad, bb)

    # ---- entropy per batch element: H = log(se) - sum(ez * z) / se ----
    ent_ref[...] = log_se - jnp.sum(ez * z, axis=0, keepdims=True) * inv_se

    # ---- prediction score: logits (argmax) or logits + Gumbel noise (sample) ----
    score = logits if deterministic else logits + g_ref[...]

    # Single packed sublane reduction: order-preserving int32 key of the f32
    # score, with the low ceil(log2(n_pad)) bits replaced by (n_pad-1-row) so the
    # smaller class index wins exact ties (matching torch argmax; scores closer
    # than ~2^-20 relative are treated as tied).
    tb_bits = max(1, (n_pad - 1).bit_length())
    tb_mask = (1 << tb_bits) - 1
    row = jax.lax.broadcasted_iota(jnp.int32, (n_pad, bb), 0)
    bits = jax.lax.bitcast_convert_type(score, jnp.int32)
    key = bits ^ ((bits >> 31) & jnp.int32(0x7FFFFFFF))           # monotone in score
    packed = (key & jnp.int32(~tb_mask)) | (jnp.int32(n_pad - 1) - row)
    best = jnp.max(packed, axis=0, keepdims=True)                 # (1, bb)
    idx = jnp.int32(n_pad - 1) - (best & jnp.int32(tb_mask))      # (1, bb) int32
    pred_ref[...] = idx

    # ---- log-prob of the chosen class (masked sublane-sum gather) ----
    sel = row == idx
    logp_ref[...] = jnp.sum(jnp.where(sel, log_probs, 0.0), axis=0, keepdims=True)


def categorical_forward(x, weight, bias, *, deterministic=False, rng_key=None,
                        block_b=1024):
    """Pallas equivalent of Categorical.forward (multi_discrete=False).

    x:      (B, num_inputs) float
    weight: (num_outputs, num_inputs)  -- native nn.Linear layout (no transpose needed)
    bias:   (num_outputs,)
    Returns (pred, clipped_pred, logp, entropy); pred/clipped_pred are (B, 1)
    int32 (torch uses int64), logp is (B, 1) f32, entropy is a scalar f32.
    """
    B, D = x.shape
    N, D2 = weight.shape
    assert D == D2, "weight must be (num_outputs, num_inputs)"

    # Pad the class axis to a sublane multiple; padded classes get -1e30 logits
    # so they never win the max nor contribute to the softmax.
    n_pad = max(8, _round_up(N, 8))

    # Batch tiling: blocks of `block_b` rows (multiple of 8; multiple of 128
    # whenever the grid has more than one step so output blocks stay lane-aligned).
    bb = min(block_b, _round_up(B, 8))
    if _round_up(B, bb) > bb:
        bb = _round_up(bb, 128)
    b_pad = _round_up(B, bb)
    num_blocks = b_pad // bb

    x_p = jnp.pad(x.astype(jnp.float32), ((0, b_pad - B), (0, 0)))
    w_p = jnp.pad(weight.astype(jnp.float32), ((0, n_pad - N), (0, 0)))
    b_p = jnp.pad(bias.astype(jnp.float32), (0, n_pad - N),
                  constant_values=_NEG_LARGE).reshape(n_pad, 1)

    in_specs = [
        pl.BlockSpec((bb, D), lambda i: (i, 0)),        # x block i (pipelined)
        pl.BlockSpec((n_pad, D), lambda i: (0, 0)),     # W, resident in VMEM
        pl.BlockSpec((n_pad, 1), lambda i: (0, 0)),     # bias, resident in VMEM
    ]
    inputs = [x_p, w_p, b_p]
    if not deterministic:
        # Gumbel-max sampling noise, one independent column per batch element.
        # TODO(synk): RNG stream differs from torch.distributions (valid samples
        # of the same distribution, not bitwise reproducible).
        if rng_key is None:
            rng_key = jax.random.PRNGKey(0)
        g = jax.random.gumbel(rng_key, (n_pad, b_pad), dtype=jnp.float32)
        in_specs.append(pl.BlockSpec((n_pad, bb), lambda i: (0, i)))
        inputs.append(g)

    out_specs = [
        pl.BlockSpec((1, bb), lambda i: (0, i)),        # pred row (lane-dense)
        pl.BlockSpec((1, bb), lambda i: (0, i)),        # logp row (lane-dense)
        pl.BlockSpec((1, bb), lambda i: (0, i)),        # per-element entropy row
    ]
    out_shape = (
        jax.ShapeDtypeStruct((1, b_pad), jnp.int32),
        jax.ShapeDtypeStruct((1, b_pad), jnp.float32),
        jax.ShapeDtypeStruct((1, b_pad), jnp.float32),
    )

    call = pl.pallas_call(
        functools.partial(_categorical_kernel, deterministic=deterministic),
        out_shape=out_shape,
        grid_spec=pltpu.PrefetchScalarGridSpec(
            num_scalar_prefetch=0,
            grid=(num_blocks,),
            in_specs=in_specs,
            out_specs=out_specs),
        compiler_params=pltpu.CompilerParams(
            dimension_semantics=("parallel",)),
    )
    pred_row, logp_row, ent_row = call(*inputs)

    pred = pred_row[0, :B].reshape(B, 1)
    logp = logp_row[0, :B].reshape(B, 1)
    entropy = jnp.mean(ent_row[0, :B])   # mean over the *real* batch only
    # pred and clipped_pred are identical for categorical heads.
    return pred, pred, logp, entropy


# TODO(synk): multi_discrete=True branch (per-head Linear(..,3) + concat) and
# evaluate_pred are not kernelized; only the single-head forward is implemented.


if __name__ == "__main__":
    key = jax.random.PRNGKey(0)
    k_x, k_w, k_s = jax.random.split(key, 3)

    B, num_inputs, num_outputs = 8, 32, 6
    x = jax.random.normal(k_x, (B, num_inputs), dtype=jnp.float32)

    # init_(nn.Linear): orthogonal weight with gain=0.01, zero bias.
    weight = jax.nn.initializers.orthogonal(scale=0.01)(
        k_w, (num_outputs, num_inputs), jnp.float32)
    bias = jnp.zeros((num_outputs,), dtype=jnp.float32)

    # stochastic path (torch default deterministic=False)
    pred, clipped_pred, logp, entropy = categorical_forward(
        x, weight, bias, deterministic=False, rng_key=k_s)
    jax.block_until_ready((pred, clipped_pred, logp, entropy))

    # deterministic path (argmax of probs)
    pred_d, clipped_d, logp_d, entropy_d = categorical_forward(
        x, weight, bias, deterministic=True)
    jax.block_until_ready((pred_d, clipped_d, logp_d, entropy_d))

    # ---- sanity checks against a pure-JAX reference ----
    logits_ref = x @ weight.T + bias
    lp_ref = jax.nn.log_softmax(logits_ref, axis=-1)
    ent_ref = jnp.mean(-jnp.sum(jnp.exp(lp_ref) * lp_ref, axis=-1))

    assert pred.shape == (B, 1) and logp.shape == (B, 1) and entropy.shape == ()
    assert pred_d.shape == (B, 1) and logp_d.shape == (B, 1)
    assert bool(jnp.all((pred >= 0) & (pred < num_outputs)))

    # deterministic: argmax, its log-prob and the entropy must match the reference
    argmax_ref = jnp.argmax(logits_ref, axis=-1).astype(jnp.int32)
    assert bool(jnp.all(pred_d[:, 0] == argmax_ref))
    lp_at_d = jnp.take_along_axis(lp_ref, pred_d, axis=-1)[:, 0]
    assert bool(jnp.allclose(logp_d[:, 0], lp_at_d, atol=1e-4))
    assert bool(jnp.allclose(entropy_d, ent_ref, atol=1e-4))
    assert bool(jnp.allclose(entropy, entropy_d, atol=1e-5))

    # stochastic: returned logp must be the log-prob of the returned sample
    lp_at_s = jnp.take_along_axis(lp_ref, pred, axis=-1)[:, 0]
    assert bool(jnp.allclose(logp[:, 0], lp_at_s, atol=1e-4))

    print("KERNEL_OK")
</pallas_src>

<mosaic_0001>
module attributes {stable_mosaic.version = 11 : i64} {
  func.func @_categorical_kernel(%arg0: i32, %arg1: memref<8x32xf32, #tpu.memory_space<vmem>>, %arg2: memref<8x32xf32, #tpu.memory_space<vmem>>, %arg3: memref<8x1xf32, #tpu.memory_space<vmem>>, %arg4: memref<8x8xf32, #tpu.memory_space<vmem>>, %arg5: memref<1x8xi32, #tpu.memory_space<vmem>>, %arg6: memref<1x8xf32, #tpu.memory_space<vmem>>, %arg7: memref<1x8xf32, #tpu.memory_space<vmem>>) attributes {dimension_semantics = [#tpu.dimension_semantics<parallel>], iteration_bounds = array<i64: 1>, scalar_prefetch = 0 : i64, scratch_operands = 0 : i64, tpu.core_type = #tpu.core_type<tc>, window_params = [{transform_indices = @transform_0, window_bounds = array<i64: 8, 32>}, {pipeline_mode = #tpu.pipeline_mode<synchronous>, transform_indices = @transform_1, window_bounds = array<i64: 8, 32>}, {pipeline_mode = #tpu.pipeline_mode<synchronous>, transform_indices = @transform_2, window_bounds = array<i64: 8, 1>}, {transform_indices = @transform_3, window_bounds = array<i64: 8, 8>}, {transform_indices = @transform_4, window_bounds = array<i64: 1, 8>}, {transform_indices = @transform_5, window_bounds = array<i64: 1, 8>}, {transform_indices = @transform_6, window_bounds = array<i64: 1, 8>}]} {
    %c0 = arith.constant 0 : index
    %c0_0 = arith.constant 0 : index
    %0 = vector.load %arg2[%c0, %c0_0] : memref<8x32xf32, #tpu.memory_space<vmem>>, vector<8x32xf32>
    %c0_1 = arith.constant 0 : index
    %c0_2 = arith.constant 0 : index
    %1 = vector.load %arg1[%c0_1, %c0_2] : memref<8x32xf32, #tpu.memory_space<vmem>>, vector<8x32xf32>
    %cst = arith.constant dense<0.000000e+00> : vector<8x8xf32>
    %2 = tpu.matmul %0, %1, %cst {dimension_numbers = #tpu.dot_dimension_numbers<[1], [1], [0], [0], [0, 0, 1, 0], [], []>} : vector<8x32xf32>, vector<8x32xf32>, vector<8x8xf32> -> vector<8x8xf32>
    %c0_3 = arith.constant 0 : index
    %c0_4 = arith.constant 0 : index
    %3 = vector.load %arg3[%c0_3, %c0_4] : memref<8x1xf32, #tpu.memory_space<vmem>>, vector<8x1xf32>
    %4 = vector.broadcast %3 : vector<8x1xf32> to vector<8x8xf32>
    %5 = arith.addf %2, %4 : vector<8x8xf32>
    %cst_5 = arith.constant dense<0xFF800000> : vector<8xf32>
    %6 = vector.multi_reduction <maximumf>, %5, %cst_5 [0] : vector<8x8xf32> to vector<8xf32>
    %7 = vector.shape_cast %6 : vector<8xf32> to vector<1x8xf32>
    %8 = vector.broadcast %7 : vector<1x8xf32> to vector<8x8xf32>
    %9 = arith.subf %5, %8 : vector<8x8xf32>
    %10 = math.exp %9 : vector<8x8xf32>
    %cst_6 = arith.constant dense<0.000000e+00> : vector<8xf32>
    %11 = vector.multi_reduction <add>, %10, %cst_6 [0] : vector<8x8xf32> to vector<8xf32>
    %12 = vector.shape_cast %11 : vector<8xf32> to vector<1x8xf32>
    %13 = math.log %12 : vector<1x8xf32>
    %cst_7 = arith.constant 1.000000e+00 : f32
    %14 = vector.broadcast %cst_7 : f32 to vector<1x8xf32>
    %15 = arith.divf %14, %12 : vector<1x8xf32>
    %16 = vector.broadcast %13 : vector<1x8xf32> to vector<8x8xf32>
    %17 = arith.subf %9, %16 : vector<8x8xf32>
    %18 = arith.mulf %10, %9 : vector<8x8xf32>
    %cst_8 = arith.constant dense<0.000000e+00> : vector<8xf32>
    %19 = vector.multi_reduction <add>, %18, %cst_8 [0] : vector<8x8xf32> to vector<8xf32>
    %20 = vector.shape_cast %19 : vector<8xf32> to vector<1x8xf32>
    %21 = arith.mulf %20, %15 : vector<1x8xf32>
    %22 = arith.subf %13, %21 : vector<1x8xf32>
    %c0_9 = arith.constant 0 : index
    %c0_10 = arith.constant 0 : index
    %23 = vector.load %arg7[%c0_9, %c0_10] : memref<1x8xf32, #tpu.memory_space<vmem>>, vector<1x8xf32>
    tpu.vector_store %arg7[%c0_9, %c0_10], %22 {strides = array<i32>} : memref<1x8xf32, #tpu.memory_space<vmem>>, vector<1x8xf32>,
    %c0_11 = arith.constant 0 : index
    %c0_12 = arith.constant 0 : index
    %24 = vector.load %arg4[%c0_11, %c0_12] : memref<8x8xf32, #tpu.memory_space<vmem>>, vector<8x8xf32>
    %25 = arith.addf %5, %24 : vector<8x8xf32>
    %26 = tpu.iota {dimensions = array<i32: 0>} : vector<8x8xi32>
    %27 = tpu.bitcast %25 : vector<8x8xf32> -> vector<8x8xi32>
    %c31_i32 = arith.constant 31 : i32
    %28 = vector.broadcast %c31_i32 : i32 to vector<8x8xi32>
    %29 = arith.shrsi %27, %28 : vector<8x8xi32>
    %c2147483647_i32 = arith.constant 2147483647 : i32
    %30 = vector.broadcast %c2147483647_i32 : i32 to vector<8x8xi32>
    %31 = arith.andi %29, %30 : vector<8x8xi32>
    %32 = arith.xori %27, %31 : vector<8x8xi32>
    %c-8_i32 = arith.constant -8 : i32
    %33 = vector.broadcast %c-8_i32 : i32 to vector<8x8xi32>
    %34 = arith.andi %32, %33 : vector<8x8xi32>
    %c7_i32 = arith.constant 7 : i32
    %35 = vector.broadcast %c7_i32 : i32 to vector<8x8xi32>
    %36 = arith.subi %35, %26 : vector<8x8xi32>
    %37 = arith.ori %34, %36 : vector<8x8xi32>
    %cst_13 = arith.constant dense<-2147483648> : vector<8xi32>
    %38 = vector.multi_reduction <maxsi>, %37, %cst_13 [0] : vector<8x8xi32> to vector<8xi32>
    %39 = vector.shape_cast %38 : vector<8xi32> to vector<1x8xi32>
    %c7_i32_14 = arith.constant 7 : i32
    %40 = vector.broadcast %c7_i32_14 : i32 to vector<1x8xi32>
    %41 = arith.andi %39, %40 : vector<1x8xi32>
    %c7_i32_15 = arith.constant 7 : i32
    %42 = vector.broadcast %c7_i32_15 : i32 to vector<1x8xi32>
    %43 = arith.subi %42, %41 : vector<1x8xi32>
    %c0_16 = arith.constant 0 : index
    %c0_17 = arith.constant 0 : index
    %44 = vector.load %arg5[%c0_16, %c0_17] : memref<1x8xi32, #tpu.memory_space<vmem>>, vector<1x8xi32>
    tpu.vector_store %arg5[%c0_16, %c0_17], %43 {strides = array<i32>} : memref<1x8xi32, #tpu.memory_space<vmem>>, vector<1x8xi32>,
    %45 = vector.broadcast %43 : vector<1x8xi32> to vector<8x8xi32>
    %46 = arith.cmpi eq, %26, %45 : vector<8x8xi32>
    %cst_18 = arith.constant 0.000000e+00 : f32
    %47 = vector.broadcast %cst_18 : f32 to vector<8x8xf32>
    %48 = arith.select %46, %17, %47 : vector<8x8xi1>, vector<8x8xf32>
    %cst_19 = arith.constant dense<0.000000e+00> : vector<8xf32>
    %49 = vector.multi_reduction <add>, %48, %cst_19 [0] : vector<8x8xf32> to vector<8xf32>
    %50 = vector.shape_cast %49 : vector<8xf32> to vector<1x8xf32>
    %c0_20 = arith.constant 0 : index
    %c0_21 = arith.constant 0 : index
    %51 = vector.load %arg6[%c0_20, %c0_21] : memref<1x8xf32, #tpu.memory_space<vmem>>, vector<1x8xf32>
    tpu.vector_store %arg6[%c0_20, %c0_21], %50 {strides = array<i32>} : memref<1x8xf32, #tpu.memory_space<vmem>>, vector<1x8xf32>,
    return
  }
  func.func @transform_0(%arg0: i32) -> (i32, i32) {
    %c0_i32 = arith.constant 0 : i32
    %c0_i32_0 = arith.constant 0 : i32
    return %arg0, %c0_i32 : i32, i32
  }
  func.func @transform_1(%arg0: i32) -> (i32, i32) {
    %c0_i32 = arith.constant 0 : i32
    %c0_i32_0 = arith.constant 0 : i32
    %c0_i32_1 = arith.constant 0 : i32
    return %c0_i32, %c0_i32_0 : i32, i32
  }
  func.func @transform_2(%arg0: i32) -> (i32, i32) {
    %c0_i32 = arith.constant 0 : i32
    %c0_i32_0 = arith.constant 0 : i32
    %c0_i32_1 = arith.constant 0 : i32
    return %c0_i32, %c0_i32_0 : i32, i32
  }
  func.func @transform_3(%arg0: i32) -> (i32, i32) {
    %c0_i32 = arith.constant 0 : i32
    %c0_i32_0 = arith.constant 0 : i32
    return %c0_i32, %arg0 : i32, i32
  }
  func.func @transform_4(%arg0: i32) -> (i32, i32) {
    %c0_i32 = arith.constant 0 : i32
    %c0_i32_0 = arith.constant 0 : i32
    return %c0_i32, %arg0 : i32, i32
  }
  func.func @transform_5(%arg0: i32) -> (i32, i32) {
    %c0_i32 = arith.constant 0 : i32
    %c0_i32_0 = arith.constant 0 : i32
    return %c0_i32, %arg0 : i32, i32
  }
  func.func @transform_6(%arg0: i32) -> (i32, i32) {
    %c0_i32 = arith.constant 0 : i32
    %c0_i32_0 = arith.constant 0 : i32
    return %c0_i32, %arg0 : i32, i32
  }
}

</mosaic_0001>

<bundles_post_ra>
// kernel: tpu_custom_call.1
= control target key start
LH: loop header
LB: loop body
LE: loop exit
PB: predicated region body
PF: predicated region fallthrough
CT: control target
= control target key end

     0   :  { %12 = vsyncpa [#allocation3], 0  ;;  %s466_s0 = inlined_call_operand.vmem [shape: f32[8,32], index: 0, kind: input, shape index: {}]   ;;  %s467_s1 = inlined_call_operand.hbm [shape: f32[8,32], index: 1, kind: input, shape index: {}]   ;;  %s468_s2 = inlined_call_operand.vmem [shape: f32[8,1], index: 2, kind: input, shape index: {}]   ;;  %s469_s3 = inlined_call_operand.vmem [shape: f32[8,8], index: 3, kind: input, shape index: {}]   ;;  %s470_s4 = inlined_call_operand.hbm [shape: s32[1,8], index: 4, kind: output, shape index: {0}]   ;;  %s471_s5 = inlined_call_operand.hbm [shape: f32[1,8], index: 5, kind: output, shape index: {1}]   ;;  %s472_s6 = inlined_call_operand.hbm [shape: f32[1,8], index: 6, kind: output, shape index: {2}]  }
   0x1   :  { %13 = vsyncpa [#allocation4], 0 }
   0x2   :  { %14 = vsyncpa [#allocation7], 0  ;;  %s347_s21 = smov [#allocation2]   ;;  %s253_s25 = scalar_lea.hbm %s467_s1, 128 }
   0x3   :  { %s23_s22 = sshll.u32 %s347_s21, 4  ;;  %p254_p0 = scmp.ne.s32.totalorder %s467_s1, %s253_s25  ;;  %s24_s22 = int_to_ptr.vmem [resolvable:$true] %s23_s22 }
   0x4   :  { %p257_p1 = scmp.lt.u32.totalorder %s253_s25, %s467_s1 }
   0x6   :  { %p259_p2 = pnand %p257_p1, %p254_p0 }
   0x8   :  { %262 = shalt.err (!%p259_p2)
}
   0x9   :  { %s263_s30 = scalar_lea.vmem %s24_s22, 128  ;;  %p268_p4 = scmp.lt.s32.totalorder %s24_s22, %s24_s22 }
   0xa   :  { %p264_p3 = scmp.ne.s32.totalorder %s24_s22, %s263_s30  ;;  %p269_p5 = scmp.lt.s32.totalorder %s263_s30, %s263_s30 }
   0xc   :  { %p270_p6 = por %p269_p5, %p268_p4 }
   0xe   :  { %p271_p7 = pnand %p270_p6, %p264_p3 }
  0x10   :  { %274 = shalt.err (!%p271_p7)
}
  0x11   :  { %26 = dma.hbm_to_vmem [thread:$0]  %s467_s1, 128, %s24_s22, [#allocation3]  }
  0x12   :  { %341 = dma.done.wait [#allocation3], 128  }
  0x13   :  { %342 = vsyncadd [#allocation3], 4294967168  ;;  %v348_v0 = vmov 0.0   ;;  %vm349_vm0 = vmmov 0   ;;  %v350_v1 = vmov 0   ;;  %vm42_vm1 = vcmask 261120  }
  0x14   :  { %234 = vmatprep.subr.mxu0 %v348_v0  ;;  %236 = vmatprep.mubr.msk.f32.mxu0 %vm349_vm0, %v348_v0  ;;  %v35_v2 = vld [vmem:[%s466_s0] sm:$0xff]  ;;  %vm119_vm2 = vcmask 64512   ;;  %v156_v9 = vlaneseq  ;;  %s351_s0 = smov [#allocation5]   ;;  %vm152_vm6 = vcmask 57344  }
  0x15   :  { %246 = vset.pattern.permute.xlu0 %v350_v1  ;;  %v36_v3 = vld [vmem:[%s468_s2] sm:$0xff]  ;;  %235 = vmatpush3.xpose.msk.msra.mxu0 %vm42_vm1, %v35_v2  ;;  %s194_s2 = sshll.u32 %s351_s0, 4  ;;  %s195_s2 = int_to_ptr.vmem [resolvable:$true] %s194_s2 }
  0x16   :  { %v34_v4 = vld [vmem:[#allocation2] sm:$0xff]  ;;  %39 = vperm.xlu0 %246, %v36_v3   ;;  %v411_v14 = vshrl.u32 %v156_v9, 7  ;;  %s279_s14 = scalar_lea.vmem %s195_s2, 32  ;;  %p280_p9 = scmp.lt.s32.totalorder %s195_s2, %s195_s2 }
  0x17   :  { %v154_v7 = vld [vmem:[%s469_s3] sm:$0xff]  ;;  %s275_s3 = scalar_lea.vmem %s195_s2, 16 }
  0x18   :  { %237 = vmatmul.mubr.msk.f32.vlgmr.msra.gmra.mrb[0].mxu0 %vm42_vm1, %v34_v4  ;;  %v163_v20 = vsub.s32 7, %v411_v14  ;;  %p276_p8 = scmp.ne.s32.totalorder %s195_s2, %s275_s3  ;;  %p281_p10 = scmp.lt.s32.totalorder %s279_s14, %s275_s3 }
  0x1a   :  { %p282_p11 = por %p281_p10, %p280_p9 }
  0x1c   :  { %p283_p12 = pnand %p282_p11, %p276_p8 }
  0x95   :  { %v40_v5 = vpop.permute.xlu0 %39 }
  0xeb   :  { %v115_v6 = vpop.f32.mrb[0].mxu0 }
  0xec   :  { %v116_v8 = vadd.f32 %v115_v6, %v40_v5  ;;  %v238_v10 = vpop.f32.mrb[1].mxu0 }
  0xee   :  { %v120_v11 = vsel %vm119_vm2, %v116_v8, -inf  ;;  %v155_v12 = vadd.f32 %v154_v7, %v116_v8 }
  0xef   :  { %v121_v13 = vrot.slane %v120_v11, 4 }
  0xf0   :  { %v159_v15 = vshra.s32 %v155_v12, 31 }
  0xf1   :  { %v122_v16 = vmax.f32 %v120_v11, %v121_v13 }
  0xf2   :  { %v160_v17 = vand.u32 2147483647, %v159_v15 }
  0xf3   :  { %v123_v18 = vrot.slane %v122_v16, 2 }
  0xf4   :  { %v161_v19 = vxor.u32 %v160_v17, %v155_v12 }
  0xf5   :  { %v124_v21 = vmax.f32 %v122_v16, %v123_v18 }
  0xf6   :  { %v162_v22 = vand.u32 4294967288, %v161_v19 }
  0xf7   :  { %v125_v23 = vrot.slane %v124_v21, 1 }
  0xf8   :  { %v164_v24 = vor.u32 %v163_v20, %v162_v22 }
  0xf9   :  { %v126_v25 = vmax.f32 %v124_v21, %v125_v23 }
  0xfa   :  { %v165_v26 = vsel %vm119_vm2, %v164_v24, 2147483648 }
  0xfb   :  { %v127_v27 = vsub.f32 %v116_v8, %v126_v25  ;;  %v166_v28 = vrot.slane %v165_v26, 4 }
  0xfd   :  { %v128_v29 = vmul.f32 1.442695, %v127_v27  ;;  %vm167_vm3 = vcmp.gt.s32.totalorder %v165_v26, %v166_v28 }
  0xfe   :  { %v168_v30 = vsel %vm167_vm3, %v165_v26, %v166_v28 }
  0xff   :  { %247 = vpow2.f32 %v128_v29  ;;  %v169_v31 = vrot.slane %v168_v30, 2 }
 0x101   :  { %vm170_vm4 = vcmp.gt.s32.totalorder %v168_v30, %v169_v31 }
 0x102   :  { %v171_v32 = vsel %vm170_vm4, %v168_v30, %v169_v31 }
 0x103   :  { %v172_v33 = vrot.slane %v171_v32, 1 }
 0x105   :  { %vm173_vm5 = vcmp.gt.s32.totalorder %v171_v32, %v172_v33 }
 0x106   :  { %v174_v34 = vsel %vm173_vm5, %v171_v32, %v172_v33 }
 0x107   :  { %v175_v35 = vand.u32 7, %v174_v34 }
 0x109   :  { %v248_v36 = vpop.eup %247  ;;  %v176_v37 = vsub.s32 7, %v175_v35 }
 0x10a   :  { %v130_v38 = vsel %vm119_vm2, %v248_v36, 0.0  ;;  %v142_v39 = vmul.f32 %v248_v36, %v127_v27 }
 0x10b   :  { %v131_v40 = vrot.slane %v130_v38, 4  ;;  %177 = vst.msk [vmem:[#allocation5] sm:$0x1] %vm152_vm6, %v176_v37 }
 0x10c   :  { %v143_v41 = vsel %vm119_vm2, %v142_v39, 0.0 }
 0x10d   :  { %286 = shalt.err (!%p283_p12)
}
 0x10e   :  { %s287_s17 = scalar_lea.hbm %s470_s4, 16 }
 0x10f   :  { %p288_p13 = scmp.ne.s32.totalorder %s470_s4, %s287_s17  ;;  %p291_p0 = scmp.lt.u32.totalorder %s287_s17, %s470_s4 }
 0x111   :  { %p293_p1 = pnand %p291_p0, %p288_p13 }
 0x113   :  { %296 = shalt.err (!%p293_p1)
}
 0x114   :  { %197 = dma.vmem_to_hbm [thread:$0]  %s195_s2, 16, %s470_s4, [#allocation4]   ;;  %v132_v42 = vadd.f32 %v131_v40, %v130_v38  ;;  %v144_v43 = vrot.slane %v143_v41, 4  ;;  %vm178_vm7 = vcmp.eq.s32.totalorder %v411_v14, %v176_v37 }
 0x115   :  { %s352_s4 = smov [#allocation6]   ;;  %s353_s25 = smov [#allocation8]  }
 0x116   :  { %v133_v44 = vrot.slane %v132_v42, 2  ;;  %v145_v46 = vadd.f32 %v144_v43, %v143_v41  ;;  %s204_s24 = sshll.u32 %s352_s4, 4  ;;  %s214_s26 = sshll.u32 %s353_s25, 4  ;;  %s205_s24 = int_to_ptr.vmem [resolvable:$true] %s204_s24  ;;  %s433_s26 = int_to_ptr.vmem [resolvable:$true] %s214_s26 }
 0x117   :  { %s297_s27 = scalar_lea.vmem %s205_s24, 16  ;;  %s301_s28 = scalar_lea.vmem %s205_s24, 32 }
 0x118   :  { %v134_v45 = vadd.f32 %v133_v44, %v132_v42  ;;  %v146_v49 = vrot.slane %v145_v46, 2  ;;  %p298_p2 = scmp.ne.s32.totalorder %s205_s24, %s297_s27  ;;  %p302_p3 = scmp.lt.s32.totalorder %s205_s24, %s205_s24 }
 0x119   :  { %p303_p4 = scmp.lt.s32.totalorder %s301_s28, %s297_s27 }
 0x11a   :  { %v135_v47 = vrot.slane %v134_v45, 1  ;;  %v147_v50 = vadd.f32 %v146_v49, %v145_v46 }
 0x11b   :  { %p304_p5 = por %p303_p4, %p302_p3 }
 0x11c   :  { %v136_v48 = vadd.f32 %v135_v47, %v134_v45  ;;  %v148_v51 = vrot.slane %v147_v50, 1 }
 0x11d   :  { %p305_p6 = pnand %p304_p5, %p298_p2 }
 0x11e   :  { %249 = vlog2.f32 %v136_v48  ;;  %v149_v53 = vadd.f32 %v148_v51, %v147_v50 }
 0x11f   :  { %251 = vrcp.f32 %v136_v48 }
 0x128   :  { %v250_v52 = vpop.eup %249 }
 0x129   :  { %v252_v54 = vpop.eup %251  ;;  %v138_v55 = vmul.f32 0.6931472, %v250_v52 }
 0x12a   :  { %v150_v56 = vmul.f32 %v252_v54, %v149_v53 }
 0x12b   :  { %v141_v57 = vsub.f32 %v127_v27, %v138_v55 }
 0x12c   :  { %v151_v58 = vsub.f32 %v138_v55, %v150_v56 }
 0x12d   :  { %v179_v59 = vsel %vm178_vm7, %v141_v57, 0.0 }
 0x12e   :  { %v180_v60 = vsel %vm119_vm2, %v179_v59, 0.0  ;;  %153 = vst.msk [vmem:[#allocation8] sm:$0x1] %vm152_vm6, %v151_v58 }
 0x12f   :  { %v181_v61 = vrot.slane %v180_v60, 4 }
 0x131   :  { %v182_v62 = vadd.f32 %v181_v61, %v180_v60 }
 0x133   :  { %v183_v63 = vrot.slane %v182_v62, 2 }
 0x135   :  { %v184_v0 = vadd.f32 %v183_v63, %v182_v62 }
 0x137   :  { %v185_v1 = vrot.slane %v184_v0, 1 }
 0x139   :  { %v186_v2 = vadd.f32 %v185_v1, %v184_v0 }
 0x13b   :  { %187 = vst.msk [vmem:[#allocation6] sm:$0x1] %vm152_vm6, %v186_v2 }
 0x13c   :  { %308 = shalt.err (!%p305_p6)
}
 0x13d   :  { %s309_s7 = scalar_lea.hbm %s471_s5, 16 }
 0x13e   :  { %p310_p7 = scmp.ne.s32.totalorder %s471_s5, %s309_s7  ;;  %p313_p8 = scmp.lt.u32.totalorder %s309_s7, %s471_s5 }
 0x140   :  { %p315_p9 = pnand %p313_p8, %p310_p7 }
 0x142   :  { %318 = shalt.err (!%p315_p9)
}
 0x143   :  { %207 = dma.vmem_to_hbm [thread:$0]  %s205_s24, 16, %s471_s5, [#allocation7]  }
 0x144   :  { %s319_s13 = scalar_lea.vmem %s433_s26, 16  ;;  %s323_s0 = scalar_lea.vmem %s433_s26, 32 }
 0x145   :  { %p320_p10 = scmp.ne.s32.totalorder %s433_s26, %s319_s13  ;;  %p324_p11 = scmp.lt.s32.totalorder %s433_s26, %s433_s26 }
 0x146   :  { %p325_p12 = scmp.lt.s32.totalorder %s323_s0, %s319_s13 }
 0x148   :  { %p326_p13 = por %p325_p12, %p324_p11 }
 0x14a   :  { %p327_p0 = pnand %p326_p13, %p320_p10 }
 0x14c   :  { %330 = shalt.err (!%p327_p0)
}
 0x14d   :  { %s331_s14 = scalar_lea.hbm %s472_s6, 16 }
 0x14e   :  { %p332_p1 = scmp.ne.s32.totalorder %s472_s6, %s331_s14  ;;  %p335_p2 = scmp.lt.u32.totalorder %s331_s14, %s472_s6 }
 0x150   :  { %p337_p3 = pnand %p335_p2, %p332_p1 }
 0x152   :  { %340 = shalt.err (!%p337_p3)
}
 0x153   :  { %217 = dma.vmem_to_hbm [thread:$0]  %s433_s26, 16, %s472_s6, [#allocation7]  }
 0x154   :  { %343 = dma.done.wait [#allocation4], 16  }
 0x155   :  { %344 = vsyncadd [#allocation4], 4294967280 }
 0x156   :  { %345 = dma.done.wait [#allocation7], 32  }
 0x157   :  { %346 = vsyncadd [#allocation7], 4294967264 }
 0x158   :  { %227 = vsyncpa [#allocation3], 1 }
 0x159   :  { %228 = vsyncpa [#allocation4], 1 }
 0x15a   :  { %229 = vsyncpa [#allocation7], 1 }

</bundles_post_ra>
